<compile_context>
chip_gen: v7x
topology: tpu7x:2x2x1
jax: 0.10.0
libtpu: 0.0.40
codegen_flags: <defaults>
</compile_context>

<pallas_src>
import functools

import jax
import jax.numpy as jnp
from jax.experimental import pallas as pl
from jax.experimental.pallas import tpu as pltpu


PAD = 128        # lane-dense padded width for hidden/output layers
IN_PAD = 8       # sublane-dense padded width for the (x, y, t) input
IN_DIM = 3       # (x, y, t)
OUT_DIM = 2      # (u, v)
N_LAYERS = 6     # 3->50->50->50->50->50->2
CHUNK = 256      # intra-tile row chunk (MXU/EUP overlap)


def _chunk_bounds(bm, chunk=CHUNK):
    """Static (offset, size) row-chunks covering bm; every piece 8-aligned."""
    bounds = []
    off = 0
    while off < bm:
        sz = min(chunk, bm - off)
        bounds.append((off, sz))
        off += sz
    return bounds


# ----------------------------------------------------------------------------
# Pallas kernel: whole MLP hot path (5x matmul+tanh, 1x matmul) per batch tile
# ----------------------------------------------------------------------------
def _pinn_mlp_kernel(x_ref, w0_ref, w_ref, b_ref, o_ref):
    # x_ref : (bm, 8)            w0_ref: (8, 128)  [compute dtype]
    # w_ref : (5, 128, 128)      b_ref : (6, 1, 128)  [f32]
    # o_ref : (bm, 128)  [f32]
    bm = x_ref.shape[0]
    bounds = _chunk_bounds(bm)
    cdtype = w0_ref.dtype  # f32 or bf16 -> drives the MXU operand dtype

    # ---- layer 0: (chunk, 8) @ (8, 128), bias-add + tanh in f32 ----
    w0 = w0_ref[...]
    b0 = b_ref[0]
    h_chunks = []
    for off, sz in bounds:
        xc = x_ref[off:off + sz, :].astype(cdtype)
        z = jnp.dot(xc, w0, preferred_element_type=jnp.float32) + b0
        h_chunks.append(jnp.tanh(z))

    # ---- hidden layers 1..4: chunked so tanh(j) overlaps matmul(j+1) ----
    for l in range(1, N_LAYERS - 1):
        wl = w_ref[l - 1]
        bl = b_ref[l]
        new_chunks = []
        for ci, (off, sz) in enumerate(bounds):
            z = jnp.dot(h_chunks[ci].astype(cdtype), wl,
                        preferred_element_type=jnp.float32) + bl
            new_chunks.append(jnp.tanh(z))
        h_chunks = new_chunks

    # ---- output layer 5: no activation ----
    w_last = w_ref[N_LAYERS - 2]
    b_last = b_ref[N_LAYERS - 1]
    for ci, (off, sz) in enumerate(bounds):
        z = jnp.dot(h_chunks[ci].astype(cdtype), w_last,
                    preferred_element_type=jnp.float32) + b_last
        o_ref[off:off + sz, :] = z.astype(o_ref.dtype)

    # TODO(synk): on v6e/v7x a bf16 tanh (EUP bf16 ~2x f32) could be enabled
    # behind a per-generation flag; kept f32 here for v5e compatibility and
    # PINN second-derivative precision.


# ----------------------------------------------------------------------------
# Parameter packing: zero-pad and split layer-0 (8,128) from the 128x128 stack
# ----------------------------------------------------------------------------
def pack_params(params, compute_dtype=jnp.float32):
    """params: list of (W (in,out), b (1,out)).

    Returns (w0 (8,128), w_rest (5,128,128), b_stack (6,1,128)).
    w0/w_rest are cast to `compute_dtype` (f32 or bf16); biases stay f32.
    Padded rows/cols are exact zeros in either dtype.
    """
    assert len(params) == N_LAYERS
    w0 = jnp.zeros((IN_PAD, PAD), jnp.float32)
    w_rest = jnp.zeros((N_LAYERS - 1, PAD, PAD), jnp.float32)
    b_stack = jnp.zeros((N_LAYERS, 1, PAD), jnp.float32)
    for l, (w, b) in enumerate(params):
        fi, fo = w.shape
        if l == 0:
            w0 = w0.at[:fi, :fo].set(w.astype(jnp.float32))
        else:
            w_rest = w_rest.at[l - 1, :fi, :fo].set(w.astype(jnp.float32))
        b_stack = b_stack.at[l, 0, :fo].set(b.reshape(-1).astype(jnp.float32))
    return w0.astype(compute_dtype), w_rest.astype(compute_dtype), b_stack


# ----------------------------------------------------------------------------
# Wrapper
# ----------------------------------------------------------------------------
@functools.partial(jax.jit, static_argnames=("block_m",))
def pinn_forward(x, w0, w_rest, b_stack, *, block_m=2048):
    """x: (N, 3) -> (N, 2) float32 (u, v)."""
    n = x.shape[0]

    # Tile size: cap at block_m, but when the batch is small choose ~n/2
    # (8-aligned) so the grid has >= 2 steps and both v7x TensorCores get
    # work; v5e/v6e (single TC) are unaffected.
    bm_half = max(8, pl.cdiv(pl.cdiv(n, 2), 8) * 8)
    bm = min(block_m, bm_half)
    n_pad = pl.cdiv(n, bm) * bm

    # Lane-light input slab: only pad (N, 3) -> (n_pad, 8); features live in
    # columns [0, 3), the rest are exact zeros (matching zero rows in w0).
    xp = jnp.zeros((n_pad, IN_PAD), jnp.float32).at[:n, :IN_DIM].set(
        x.astype(jnp.float32))

    # Advisory cost estimate (padded math, actual DMA volume).
    w_itemsize = jnp.dtype(w0.dtype).itemsize
    w_elems = IN_PAD * PAD + (N_LAYERS - 1) * PAD * PAD
    flops = 2 * n_pad * w_elems
    transcendentals = (N_LAYERS - 1) * n_pad * PAD
    bytes_accessed = (n_pad * IN_PAD * 4          # input
                      + n_pad * PAD * 4           # output
                      + w_elems * w_itemsize      # weights
                      + N_LAYERS * PAD * 4)       # biases

    grid = (n_pad // bm,)
    out = pl.pallas_call(
        _pinn_mlp_kernel,
        out_shape=jax.ShapeDtypeStruct((n_pad, PAD), jnp.float32),
        grid_spec=pltpu.PrefetchScalarGridSpec(
            num_scalar_prefetch=0,
            grid=grid,
            in_specs=[
                pl.BlockSpec((bm, IN_PAD), lambda i: (i, 0)),                 # x tile
                pl.BlockSpec((IN_PAD, PAD), lambda i: (0, 0)),                # layer-0 W
                pl.BlockSpec((N_LAYERS - 1, PAD, PAD), lambda i: (0, 0, 0)),  # W stack
                pl.BlockSpec((N_LAYERS, 1, PAD), lambda i: (0, 0, 0)),        # biases
            ],
            out_specs=pl.BlockSpec((bm, PAD), lambda i: (i, 0)),
        ),
        compiler_params=pltpu.CompilerParams(
            dimension_semantics=("parallel",)),
        cost_estimate=pl.CostEstimate(
            flops=flops, transcendentals=transcendentals,
            bytes_accessed=bytes_accessed),
    )(xp, w0, w_rest, b_stack)

    # Strip batch padding and the 126 zero output lanes.
    return out[:n, :OUT_DIM]


# ----------------------------------------------------------------------------
# Deterministic parameter init (PyTorch nn.Linear default: U(-1/sqrt(fan_in), ..))
# ----------------------------------------------------------------------------
def init_pinn_params(key):
    dims = [3, 50, 50, 50, 50, 50, 2]
    params = []
    for i in range(len(dims) - 1):
        fan_in, fan_out = dims[i], dims[i + 1]
        key, kw, kb = jax.random.split(key, 3)
        bound = 1.0 / jnp.sqrt(jnp.float32(fan_in))
        w = jax.random.uniform(kw, (fan_in, fan_out), jnp.float32, -bound, bound)
        b = jax.random.uniform(kb, (1, fan_out), jnp.float32, -bound, bound)
        params.append((w, b))
    # Extra scalar parameters of the module (not used in forward()):
    beta_0 = jnp.ones((1,), jnp.float32) * -2.0
    beta_1 = jnp.ones((1,), jnp.float32) * 0.5
    gama_0 = jnp.ones((1,), jnp.float32) * 1.5
    # TODO(synk): LOSS_1/LOSS_2 need autograd second derivatives w.r.t. inputs
    # and MSE reductions; only the forward pass is a Pallas kernel here.
    return params, (beta_0, beta_1, gama_0)


def pinn_forward_ref(x, params):
    h = x
    for i, (w, b) in enumerate(params):
        h = h @ w + b
        if i < len(params) - 1:
            h = jnp.tanh(h)
    return h


if __name__ == "__main__":
    key = jax.random.PRNGKey(0)
    kparam, kx = jax.random.split(key)

    params, _extras = init_pinn_params(kparam)

    # Small batch of collocation points (x, y, t); non-multiple of the tile
    # size to exercise both the batch-padding and the >=2-grid-step paths.
    n = 200
    x = jax.random.uniform(kx, (n, 3), jnp.float32, -1.0, 1.0)
    ref = pinn_forward_ref(x, params)

    # --- f32 path (training default, bit-comparable to the reference) ---
    w0_f32, w_f32, b_f32 = pack_params(params, compute_dtype=jnp.float32)
    out_f32 = jax.block_until_ready(pinn_forward(x, w0_f32, w_f32, b_f32))
    assert out_f32.shape == (n, OUT_DIM)
    assert jnp.allclose(out_f32, ref, atol=1e-5, rtol=1e-5), "f32 mismatch vs reference"

    # --- bf16-operand MXU path (f32 accumulate), looser tolerance ---
    w0_bf, w_bf, b_bf = pack_params(params, compute_dtype=jnp.bfloat16)
    out_bf = jax.block_until_ready(pinn_forward(x, w0_bf, w_bf, b_bf))
    assert out_bf.shape == (n, OUT_DIM)
    max_err = float(jnp.max(jnp.abs(out_bf - ref)))
    assert max_err < 0.1, f"bf16 path diverged from f32 reference: {max_err}"

    print("KERNEL_OK")
</pallas_src>

<mosaic_0001>
module attributes {stable_mosaic.version = 11 : i64} {
  func.func @_pinn_mlp_kernel(%arg0: i32, %arg1: memref<104x8xf32, #tpu.memory_space<vmem>>, %arg2: memref<8x128xf32, #tpu.memory_space<vmem>>, %arg3: memref<5x128x128xf32, #tpu.memory_space<vmem>>, %arg4: memref<6x1x128xf32, #tpu.memory_space<vmem>>, %arg5: memref<104x128xf32, #tpu.memory_space<vmem>>) attributes {dimension_semantics = [#tpu.dimension_semantics<parallel>], iteration_bounds = array<i64: 2>, scalar_prefetch = 0 : i64, scratch_operands = 0 : i64, tpu.core_type = #tpu.core_type<tc>, window_params = [{transform_indices = @transform_0, window_bounds = array<i64: 104, 8>}, {pipeline_mode = #tpu.pipeline_mode<synchronous>, transform_indices = @transform_1, window_bounds = array<i64: 8, 128>}, {pipeline_mode = #tpu.pipeline_mode<synchronous>, transform_indices = @transform_2, window_bounds = array<i64: 5, 128, 128>}, {pipeline_mode = #tpu.pipeline_mode<synchronous>, transform_indices = @transform_3, window_bounds = array<i64: 6, 1, 128>}, {transform_indices = @transform_4, window_bounds = array<i64: 104, 128>}]} {
    %c0 = arith.constant 0 : index
    %c0_0 = arith.constant 0 : index
    %0 = vector.load %arg2[%c0, %c0_0] : memref<8x128xf32, #tpu.memory_space<vmem>>, vector<8x128xf32>
    %c0_1 = arith.constant 0 : index
    %c0_2 = arith.constant 0 : index
    %c0_3 = arith.constant 0 : index
    %1 = vector.load %arg4[%c0_1, %c0_2, %c0_3] : memref<6x1x128xf32, #tpu.memory_space<vmem>>, vector<1x1x128xf32>
    %2 = vector.shape_cast %1 : vector<1x1x128xf32> to vector<1x128xf32>
    %c0_4 = arith.constant 0 : index
    %c0_5 = arith.constant 0 : index
    %3 = vector.load %arg1[%c0_4, %c0_5] : memref<104x8xf32, #tpu.memory_space<vmem>>, vector<104x8xf32>
    %cst = arith.constant dense<0.000000e+00> : vector<104x128xf32>
    %4 = tpu.matmul %3, %0, %cst {dimension_numbers = #tpu.dot_dimension_numbers<[1], [0], [0], [1], [0, 0, 1, 1], [], []>} : vector<104x8xf32>, vector<8x128xf32>, vector<104x128xf32> -> vector<104x128xf32>
    %5 = vector.broadcast %2 : vector<1x128xf32> to vector<104x128xf32>
    %6 = arith.addf %4, %5 : vector<104x128xf32>
    %7 = math.tanh %6 : vector<104x128xf32>
    %c0_6 = arith.constant 0 : index
    %c0_7 = arith.constant 0 : index
    %c0_8 = arith.constant 0 : index
    %8 = vector.load %arg3[%c0_6, %c0_7, %c0_8] : memref<5x128x128xf32, #tpu.memory_space<vmem>>, vector<1x128x128xf32>
    %9 = vector.shape_cast %8 : vector<1x128x128xf32> to vector<128x128xf32>
    %c1 = arith.constant 1 : index
    %c0_9 = arith.constant 0 : index
    %c0_10 = arith.constant 0 : index
    %10 = vector.load %arg4[%c1, %c0_9, %c0_10] : memref<6x1x128xf32, #tpu.memory_space<vmem>>, vector<1x1x128xf32>
    %11 = vector.shape_cast %10 : vector<1x1x128xf32> to vector<1x128xf32>
    %cst_11 = arith.constant dense<0.000000e+00> : vector<104x128xf32>
    %12 = tpu.matmul %7, %9, %cst_11 {dimension_numbers = #tpu.dot_dimension_numbers<[1], [0], [0], [1], [0, 0, 1, 1], [], []>} : vector<104x128xf32>, vector<128x128xf32>, vector<104x128xf32> -> vector<104x128xf32>
    %13 = vector.broadcast %11 : vector<1x128xf32> to vector<104x128xf32>
    %14 = arith.addf %12, %13 : vector<104x128xf32>
    %15 = math.tanh %14 : vector<104x128xf32>
    %c1_12 = arith.constant 1 : index
    %c0_13 = arith.constant 0 : index
    %c0_14 = arith.constant 0 : index
    %16 = vector.load %arg3[%c1_12, %c0_13, %c0_14] : memref<5x128x128xf32, #tpu.memory_space<vmem>>, vector<1x128x128xf32>
    %17 = vector.shape_cast %16 : vector<1x128x128xf32> to vector<128x128xf32>
    %c2 = arith.constant 2 : index
    %c0_15 = arith.constant 0 : index
    %c0_16 = arith.constant 0 : index
    %18 = vector.load %arg4[%c2, %c0_15, %c0_16] : memref<6x1x128xf32, #tpu.memory_space<vmem>>, vector<1x1x128xf32>
    %19 = vector.shape_cast %18 : vector<1x1x128xf32> to vector<1x128xf32>
    %cst_17 = arith.constant dense<0.000000e+00> : vector<104x128xf32>
    %20 = tpu.matmul %15, %17, %cst_17 {dimension_numbers = #tpu.dot_dimension_numbers<[1], [0], [0], [1], [0, 0, 1, 1], [], []>} : vector<104x128xf32>, vector<128x128xf32>, vector<104x128xf32> -> vector<104x128xf32>
    %21 = vector.broadcast %19 : vector<1x128xf32> to vector<104x128xf32>
    %22 = arith.addf %20, %21 : vector<104x128xf32>
    %23 = math.tanh %22 : vector<104x128xf32>
    %c2_18 = arith.constant 2 : index
    %c0_19 = arith.constant 0 : index
    %c0_20 = arith.constant 0 : index
    %24 = vector.load %arg3[%c2_18, %c0_19, %c0_20] : memref<5x128x128xf32, #tpu.memory_space<vmem>>, vector<1x128x128xf32>
    %25 = vector.shape_cast %24 : vector<1x128x128xf32> to vector<128x128xf32>
    %c3 = arith.constant 3 : index
    %c0_21 = arith.constant 0 : index
    %c0_22 = arith.constant 0 : index
    %26 = vector.load %arg4[%c3, %c0_21, %c0_22] : memref<6x1x128xf32, #tpu.memory_space<vmem>>, vector<1x1x128xf32>
    %27 = vector.shape_cast %26 : vector<1x1x128xf32> to vector<1x128xf32>
    %cst_23 = arith.constant dense<0.000000e+00> : vector<104x128xf32>
    %28 = tpu.matmul %23, %25, %cst_23 {dimension_numbers = #tpu.dot_dimension_numbers<[1], [0], [0], [1], [0, 0, 1, 1], [], []>} : vector<104x128xf32>, vector<128x128xf32>, vector<104x128xf32> -> vector<104x128xf32>
    %29 = vector.broadcast %27 : vector<1x128xf32> to vector<104x128xf32>
    %30 = arith.addf %28, %29 : vector<104x128xf32>
    %31 = math.tanh %30 : vector<104x128xf32>
    %c3_24 = arith.constant 3 : index
    %c0_25 = arith.constant 0 : index
    %c0_26 = arith.constant 0 : index
    %32 = vector.load %arg3[%c3_24, %c0_25, %c0_26] : memref<5x128x128xf32, #tpu.memory_space<vmem>>, vector<1x128x128xf32>
    %33 = vector.shape_cast %32 : vector<1x128x128xf32> to vector<128x128xf32>
    %c4 = arith.constant 4 : index
    %c0_27 = arith.constant 0 : index
    %c0_28 = arith.constant 0 : index
    %34 = vector.load %arg4[%c4, %c0_27, %c0_28] : memref<6x1x128xf32, #tpu.memory_space<vmem>>, vector<1x1x128xf32>
    %35 = vector.shape_cast %34 : vector<1x1x128xf32> to vector<1x128xf32>
    %cst_29 = arith.constant dense<0.000000e+00> : vector<104x128xf32>
    %36 = tpu.matmul %31, %33, %cst_29 {dimension_numbers = #tpu.dot_dimension_numbers<[1], [0], [0], [1], [0, 0, 1, 1], [], []>} : vector<104x128xf32>, vector<128x128xf32>, vector<104x128xf32> -> vector<104x128xf32>
    %37 = vector.broadcast %35 : vector<1x128xf32> to vector<104x128xf32>
    %38 = arith.addf %36, %37 : vector<104x128xf32>
    %39 = math.tanh %38 : vector<104x128xf32>
    %c4_30 = arith.constant 4 : index
    %c0_31 = arith.constant 0 : index
    %c0_32 = arith.constant 0 : index
    %40 = vector.load %arg3[%c4_30, %c0_31, %c0_32] : memref<5x128x128xf32, #tpu.memory_space<vmem>>, vector<1x128x128xf32>
    %41 = vector.shape_cast %40 : vector<1x128x128xf32> to vector<128x128xf32>
    %c5 = arith.constant 5 : index
    %c0_33 = arith.constant 0 : index
    %c0_34 = arith.constant 0 : index
    %42 = vector.load %arg4[%c5, %c0_33, %c0_34] : memref<6x1x128xf32, #tpu.memory_space<vmem>>, vector<1x1x128xf32>
    %43 = vector.shape_cast %42 : vector<1x1x128xf32> to vector<1x128xf32>
    %cst_35 = arith.constant dense<0.000000e+00> : vector<104x128xf32>
    %44 = tpu.matmul %39, %41, %cst_35 {dimension_numbers = #tpu.dot_dimension_numbers<[1], [0], [0], [1], [0, 0, 1, 1], [], []>} : vector<104x128xf32>, vector<128x128xf32>, vector<104x128xf32> -> vector<104x128xf32>
    %45 = vector.broadcast %43 : vector<1x128xf32> to vector<104x128xf32>
    %46 = arith.addf %44, %45 : vector<104x128xf32>
    %c0_36 = arith.constant 0 : index
    %c0_37 = arith.constant 0 : index
    %47 = vector.load %arg5[%c0_36, %c0_37] : memref<104x128xf32, #tpu.memory_space<vmem>>, vector<104x128xf32>
    tpu.vector_store %arg5[%c0_36, %c0_37], %46 {strides = array<i32>} : memref<104x128xf32, #tpu.memory_space<vmem>>, vector<104x128xf32>,
    return
  }
  func.func @transform_0(%arg0: i32) -> (i32, i32) {
    %c0_i32 = arith.constant 0 : i32
    %c0_i32_0 = arith.constant 0 : i32
    return %arg0, %c0_i32 : i32, i32
  }
  func.func @transform_1(%arg0: i32) -> (i32, i32) {
    %c0_i32 = arith.constant 0 : i32
    %c0_i32_0 = arith.constant 0 : i32
    %c0_i32_1 = arith.constant 0 : i32
    return %c0_i32, %c0_i32_0 : i32, i32
  }
  func.func @transform_2(%arg0: i32) -> (i32, i32, i32) {
    %c0_i32 = arith.constant 0 : i32
    %c0_i32_0 = arith.constant 0 : i32
    %c0_i32_1 = arith.constant 0 : i32
    %c0_i32_2 = arith.constant 0 : i32
    return %c0_i32, %c0_i32_0, %c0_i32_1 : i32, i32, i32
  }
  func.func @transform_3(%arg0: i32) -> (i32, i32, i32) {
    %c0_i32 = arith.constant 0 : i32
    %c0_i32_0 = arith.constant 0 : i32
    %c0_i32_1 = arith.constant 0 : i32
    %c0_i32_2 = arith.constant 0 : i32
    return %c0_i32, %c0_i32_0, %c0_i32_1 : i32, i32, i32
  }
  func.func @transform_4(%arg0: i32) -> (i32, i32) {
    %c0_i32 = arith.constant 0 : i32
    %c0_i32_0 = arith.constant 0 : i32
    return %arg0, %c0_i32 : i32, i32
  }
}

</mosaic_0001>

<bundles_post_ra>
// kernel: pinn_forward.1
= control target key start
LH: loop header
LB: loop body
LE: loop exit
PB: predicated region body
PF: predicated region fallthrough
CT: control target
= control target key end

     0   :  { %9 = vsyncpa [#allocation3], 0  ;;  %s2278_s15 = smov 0   ;;  %s2688_s0 = inlined_call_operand.vmem [shape: f32[208,8], index: 0, kind: input, shape index: {}]   ;;  %s2689_s1 = inlined_call_operand.vmem [shape: f32[8,128], index: 1, kind: input, shape index: {}]   ;;  %s2690_s2 = inlined_call_operand.hbm [shape: f32[5,128,128], index: 2, kind: input, shape index: {}]   ;;  %s2691_s3 = inlined_call_operand.vmem [shape: f32[6,1,128], index: 3, kind: input, shape index: {}]   ;;  %s2692_s4 = inlined_call_operand.vmem [shape: f32[208,128], index: 4, kind: output, shape index: {}]  }
   0x1 LB: > { %s1327_s16 = sadd.s32 4294967295, %s2245_s15   ;;  %p1329_p0 = scmp.ge.s32.totalorder %s2245_s15, 1  ;;  %s2245_s15 = sphi %s2278_s15, %s15_s15  }
   0x2   : > { %p135_p1 = scmp.lt.s32.totalorder %s2245_s15, 3  ;;  %s2247_s17 = smov [#allocation2]  }
   0x3   : > { %s150_s18 = sshll.u32 %s2247_s17, 4  ;;  %p2292_p3 = scmp.eq.s32.totalorder %s1327_s16, 0  ;;  %s151_s18 = int_to_ptr.vmem [resolvable:$true] %s150_s18 }
   0x4   : > { %p2286_p2 = pnand %p1329_p0, %p135_p1  ;;  %s2207_s24 = scalar_lea.hbm %s2690_s2, 10240 }
   0x5   : > { %s2697_s20 = scalar_select %p2292_p3, 1, 0 }
   0x6   : > { %s2696_s19 = scalar_select %p2286_p2, 1, 0 }
   0x7   : > { %p2057_p4 = pneg %p2286_p2  ;;  %p2208_p6 = scmp.ne.s32.totalorder %s2690_s2, %s2207_s24 }
   0x8   : > { %p2214_p10 = scmp.lt.u32.totalorder %s2207_s24, %s2690_s2 }
   0x9   : > { %p2300_p5 = pnand %p2292_p3, %p2057_p4 }
   0xb   : > { %p2209_p7 = pneg %p2300_p5 }
   0xd   : > { %p2210_p8 = pnand %p2209_p7, %p2208_p6 }
   0xf   : > { %p2211_p9 = pneg %p2210_p8 }
  0x11   : > { %p2216_p11 = pnand %p2214_p10, %p2211_p9 }
  0x13   : > { %2219 = shalt.err (!%p2216_p11)
}
  0x14   : > { %s2220_s29 = scalar_lea.vmem %s151_s18, 10240  ;;  %p2228_p1 = scmp.lt.s32.totalorder %s151_s18, %s151_s18 }
  0x15   : > { %p2221_p12 = scmp.ne.s32.totalorder %s151_s18, %s2220_s29  ;;  %p2229_p4 = scmp.lt.s32.totalorder %s2220_s29, %s2220_s29 }
  0x17   : > { %p2223_p13 = pnand %p2221_p12, %p2209_p7  ;;  %p2230_p3 = por %p2229_p4, %p2228_p1 }
  0x19   : > { %p2224_p0 = pneg %p2223_p13 }
  0x1b   : > { %p2231_p2 = pnand %p2230_p3, %p2224_p0 }
  0x1d   : > { %2234 = shalt.err (!%p2231_p2)
}
  0x1e   : > { %s2248_s30 = smov 128   ;;  %s2249_s5 = smov 8  }
  0x1f   : > { %2060 = dma.hbm_to_vmem [thread:$0]  (!%p2300_p5), %s2690_s2, 10240, %s151_s18, [#allocation3], %s2248_s30, %s2248_s30, %s2249_s5  }
  0x20   : > { %p2699_p6 = scmp.ne.s32.totalorder %s2696_s19, 0 }
  0x21   : > { %p2700_p8 = scmp.ne.s32.totalorder (!%p2699_p6), %s2697_s20, 0 }
  0x22   : > { %178 = sbr.rel (%p2699_p6) target bundleno = 1438 (0x59e), region = 36 }
  0x29   : > { %2240 = dma.done.wait (%p2700_p8), [#allocation3], 10240  }
  0x2a   : > { %2242 = vsyncadd (%p2700_p8), [#allocation3], 4294957056  ;;  %s204_s8 = smul.u32 13, %s1327_s16  ;;  %v2250_v0 = vmov 0.0   ;;  %vm2251_vm0 = vmmov 0   ;;  %v2252_v1 = vmov 0.0|0.0  }
  0x2b   : > { %1521 = vmatprep.subr.mxu0 %v2250_v0  ;;  %1523 = vmatprep.mubr.msk.f32.mxu0 %vm2251_vm0, %v2250_v0  ;;  %vm237_vm1 = vcmask 64512   ;;  %v216_v2 = vld [vmem:[%s2689_s1] sm:$0xff]  ;;  %v421_v4 = vld [vmem:[#allocation2 + $0x8] sm:$0xff]  ;;  %v422_v8 = vld [vmem:[#allocation2 + $0x10] sm:$0xff] }
  0x2c   : > { %p205_p2 = scmp.lt.s32.totalorder %s204_s8, 25  ;;  %1917 = vmatprep.subr.bf16.mxu1 %v2252_v1  ;;  %1594 = vmatprep.mubr.msk.f32.mxu1 %vm2251_vm0, %v2250_v0  ;;  %v420_v3 = vld [vmem:[#allocation2] sm:$0xff]  ;;  %v423_v9 = vld [vmem:[#allocation2 + $0x18] sm:$0xff]  ;;  %v425_v12 = vld [vmem:[#allocation2 + $0x28] sm:$0xff] }
  0x2d   : > { %1522 = vmatpush3.msra.mxu0 %v216_v2  ;;  %v1918_v6 = vpack.c.bf16 %v421_v4, %v420_v3  ;;  %v1921_v10 = vpack.c.bf16 %v423_v9, %v422_v8  ;;  %v424_v11 = vld [vmem:[#allocation2 + $0x20] sm:$0xff]  ;;  %v426_v15 = vld [vmem:[#allocation2 + $0x30] sm:$0xff]  ;;  %v427_v16 = vld [vmem:[#allocation2 + $0x38] sm:$0xff] }
  0x2e   : > { %s2702_s8 = smov (!%p205_p2, %s204_s8), 25  ;;  %1941 = vmatprep.subr.bf16.mxu0 %v2252_v1  ;;  %v1924_v14 = vpack.c.bf16 %v425_v12, %v424_v11  ;;  %v1927_v18 = vpack.c.bf16 %v427_v16, %v426_v15  ;;  %v428_v19 = vld [vmem:[#allocation2 + $0x40] sm:$0xff]  ;;  %v429_v20 = vld [vmem:[#allocation2 + $0x48] sm:$0xff]  ;;  %v430_v31 = vld [vmem:[#allocation2 + $0x50] sm:$0xff] }
  0x2f   : > { %s1334_s9 = sshll.u32 %s2702_s8, 3  ;;  %1919 = vmatpush3.bf16.msra.mxu1 %v1918_v6  ;;  %v1930_v22 = vpack.c.bf16 %v429_v20, %v428_v19  ;;  %v431_v32 = vld [vmem:[#allocation2 + $0x58] sm:$0xff]  ;;  %v432_v34 = vld [vmem:[#allocation2 + $0x60] sm:$0xff]  ;;  %v433_v35 = vld [vmem:[#allocation2 + $0x68] sm:$0xff] }
  0x30   : > { %s2345_s14 = scalar_lea.vmem %s2688_s0, %s1334_s9  ;;  %1920 = vmatprep.subr.bf16.mxu1 %v2252_v1  ;;  %v1933_v33 = vpack.c.bf16 %v431_v32, %v430_v31  ;;  %v1936_v36 = vpack.c.bf16 %v433_v35, %v432_v34  ;;  %v434_v37 = vld [vmem:[#allocation2 + $0x70] sm:$0xff]  ;;  %v435_v38 = vld [vmem:[#allocation2 + $0x78] sm:$0xff]  ;;  %v588_v40 = vld [vmem:[#allocation2 + $0x80] sm:$0xff]  ;;  %s2670_s30 = scalar_lea.vmem %s2692_s4, %s1334_s9 }
  0x31   : > { %v218_v5 = vld [vmem:[%s2345_s14] sm:$0xff]  ;;  %v219_v7 = vld [vmem:[%s2345_s14 + $0x8] sm:$0xff]  ;;  %v220_v13 = vld [vmem:[%s2345_s14 + $0x10] sm:$0xff]  ;;  %v1939_v39 = vpack.c.bf16 %v435_v38, %v434_v37 }
  0x32   : > { %1524 = vmatmul.mubr.msk.f32.vlgmr.msra.gmra.mrb[0].mxu0 %vm237_vm1, %v218_v5  ;;  %v221_v17 = vld [vmem:[%s2345_s14 + $0x18] sm:$0xff]  ;;  %v222_v21 = vld [vmem:[%s2345_s14 + $0x20] sm:$0xff]  ;;  %v223_v23 = vld [vmem:[%s2345_s14 + $0x28] sm:$0xff] }
  0x33   : > { %1526 = vmatprep.mubr.msk.f32.mxu0 %vm2251_vm0, %v2250_v0  ;;  %1922 = vmatpush3.bf16.msra.mxu1 %v1921_v10  ;;  %v224_v24 = vld [vmem:[%s2345_s14 + $0x30] sm:$0xff]  ;;  %v225_v25 = vld [vmem:[%s2345_s14 + $0x38] sm:$0xff]  ;;  %v226_v26 = vld [vmem:[%s2345_s14 + $0x40] sm:$0xff] }
  0x34   : > { %1923 = vmatprep.subr.bf16.mxu1 %v2252_v1  ;;  %v227_v27 = vld [vmem:[%s2345_s14 + $0x48] sm:$0xff]  ;;  %v228_v28 = vld [vmem:[%s2345_s14 + $0x50] sm:$0xff]  ;;  %v229_v29 = vld [vmem:[%s2345_s14 + $0x58] sm:$0xff] }
  0x35   : > { %v230_v30 = vld [vmem:[%s2345_s14 + $0x60] sm:$0xff]  ;;  %v589_v41 = vld [vmem:[#allocation2 + $0x88] sm:$0xff]  ;;  %v590_v42 = vld [vmem:[#allocation2 + $0x90] sm:$0xff] }
  0x36   : > { %1527 = vmatmul.mubr.msk.f32.gmra.mrb[2].mxu0 %vm237_vm1, %v219_v7  ;;  %v1942_v43 = vpack.c.bf16 %v589_v41, %v588_v40  ;;  %v591_v44 = vld [vmem:[#allocation2 + $0x98] sm:$0xff]  ;;  %v592_v46 = vld [vmem:[#allocation2 + $0xa0] sm:$0xff]  ;;  %v593_v47 = vld [vmem:[#allocation2 + $0xa8] sm:$0xff] }
  0x37   : > { %1529 = vmatprep.mubr.msk.f32.mxu0 %vm2251_vm0, %v2250_v0  ;;  %1925 = vmatpush3.bf16.msra.mxu1 %v1924_v14  ;;  %v1945_v45 = vpack.c.bf16 %v591_v44, %v590_v42  ;;  %v1948_v48 = vpack.c.bf16 %v593_v47, %v592_v46  ;;  %v594_v49 = vld [vmem:[#allocation2 + $0xb0] sm:$0xff]  ;;  %v595_v50 = vld [vmem:[#allocation2 + $0xb8] sm:$0xff]  ;;  %v596_v52 = vld [vmem:[#allocation2 + $0xc0] sm:$0xff] }
  0x38   : > { %1926 = vmatprep.subr.bf16.mxu1 %v2252_v1  ;;  %1943 = vmatpush3.bf16.msra.mxu0 %v1942_v43  ;;  %v1951_v51 = vpack.c.bf16 %v595_v50, %v594_v49  ;;  %v597_v53 = vld [vmem:[#allocation2 + $0xc8] sm:$0xff]  ;;  %v598_v55 = vld [vmem:[#allocation2 + $0xd0] sm:$0xff]  ;;  %v599_v56 = vld [vmem:[#allocation2 + $0xd8] sm:$0xff] }
  0x39   : > { %1944 = vmatprep.subr.bf16.mxu0 %v2252_v1  ;;  %v1954_v54 = vpack.c.bf16 %v597_v53, %v596_v52  ;;  %v1957_v57 = vpack.c.bf16 %v599_v56, %v598_v55  ;;  %v2417_v58 = vld [vmem:[%s2691_s3] ss:$0 sm:$0xff]  ;;  %v601_v50 = vld [vmem:[#allocation2 + $0xe8] sm:$0xff]  ;;  %v602_v52 = vld [vmem:[#allocation2 + $0xf0] sm:$0xff] }
  0x3a   : > { %1530 = vmatmul.mubr.msk.f32.gmra.mrb[4].mxu0 %vm237_vm1, %v220_v13  ;;  %v600_v49 = vld [vmem:[#allocation2 + $0xe0] sm:$0xff]  ;;  %v603_v53 = vld [vmem:[#allocation2 + $0xf8] sm:$0xff]  ;;  %v757_v56 = vld [vmem:[#allocation2 + $0x108] sm:$0xff] }
  0x3b   : > { %1532 = vmatprep.mubr.msk.f32.mxu0 %vm2251_vm0, %v2250_v0  ;;  %1928 = vmatpush3.bf16.msra.mxu1 %v1927_v18  ;;  %v756_v55 = vld [vmem:[#allocation2 + $0x100] sm:$0xff] }
  0x3c   : > { %1929 = vmatprep.subr.bf16.mxu1 %v2252_v1  ;;  %1946 = vmatpush3.bf16.msra.mxu0 %v1945_v45 }
  0x3d   : > { %1947 = vmatprep.subr.bf16.mxu0 %v2252_v1 }
  0x3e   : > { %1533 = vmatmul.mubr.msk.f32.gmra.mrb[6].mxu0 %vm237_vm1, %v221_v17 }
  0x3f   : > { %1535 = vmatprep.mubr.msk.f32.mxu0 %vm2251_vm0, %v2250_v0  ;;  %1931 = vmatpush3.bf16.msra.mxu1 %v1930_v22 }
  0x40   : > { %1932 = vmatprep.subr.bf16.mxu1 %v2252_v1  ;;  %1949 = vmatpush3.bf16.msra.mxu0 %v1948_v48 }
  0x41   : > { %1950 = vmatprep.subr.bf16.mxu0 %v2252_v1 }
  0x42   : > { %1536 = vmatmul.mubr.msk.f32.gmra.mrb[8].mxu0 %vm237_vm1, %v222_v21 }
  0x43   : > { %1538 = vmatprep.mubr.msk.f32.mxu0 %vm2251_vm0, %v2250_v0  ;;  %1934 = vmatpush3.bf16.msra.mxu1 %v1933_v33 }
  0x44   : > { %1935 = vmatprep.subr.bf16.mxu1 %v2252_v1  ;;  %1952 = vmatpush3.bf16.msra.mxu0 %v1951_v51  ;;  %v1960_v51 = vpack.c.bf16 %v601_v50, %v600_v49 }
  0x45   : > { %1953 = vmatprep.subr.bf16.mxu0 %v2252_v1 }
  0x46   : > { %1539 = vmatmul.mubr.msk.f32.gmra.mrb[10].mxu0 %vm237_vm1, %v223_v23 }
  0x47   : > { %1541 = vmatprep.mubr.msk.f32.mxu0 %vm2251_vm0, %v2250_v0  ;;  %1937 = vmatpush3.bf16.msra.mxu1 %v1936_v36 }
  0x48   : > { %1938 = vmatprep.subr.bf16.mxu1 %v2252_v1  ;;  %1955 = vmatpush3.bf16.msra.mxu0 %v1954_v54  ;;  %v1963_v54 = vpack.c.bf16 %v603_v53, %v602_v52 }
  0x49   : > { %1956 = vmatprep.subr.bf16.mxu0 %v2252_v1 }
  0x4a   : > { %1542 = vmatmul.mubr.msk.f32.gmra.mrb[12].mxu0 %vm237_vm1, %v224_v24 }
  0x4b   : > { %1544 = vmatprep.mubr.msk.f32.mxu0 %vm2251_vm0, %v2250_v0  ;;  %1940 = vmatpush3.bf16.msra.mxu1 %v1939_v39 }
  0x4c   : > { %1965 = vmatprep.subr.bf16.mxu1 %v2252_v1  ;;  %1958 = vmatpush3.bf16.msra.mxu0 %v1957_v57  ;;  %v758_v57 = vld [vmem:[#allocation2 + $0x110] sm:$0xff] }
  0x4d   : > { %1959 = vmatprep.subr.bf16.mxu0 %v2252_v1 }
  0x4e   : > { %1545 = vmatmul.mubr.msk.f32.gmra.mrb[14].mxu0 %vm237_vm1, %v225_v25 }
  0x4f   : > { %1547 = vmatprep.mubr.msk.f32.mxu0 %vm2251_vm0, %v2250_v0 }
  0x50   : > { %1961 = vmatpush3.bf16.msra.mxu0 %v1960_v51 }
  0x51   : > { %1962 = vmatprep.subr.bf16.mxu0 %v2252_v1 }
  0x52   : > { %1548 = vmatmul.mubr.msk.f32.gmra.mrb[16].mxu0 %vm237_vm1, %v226_v26 }
  0x53   : > { %1550 = vmatprep.mubr.msk.f32.mxu0 %vm2251_vm0, %v2250_v0 }
  0x54   : > { %1964 = vmatpush3.bf16.msra.mxu0 %v1963_v54 }
  0x55   : > { %1989 = vmatprep.subr.bf16.mxu0 %v2252_v1 }
  0x56   : > { %1551 = vmatmul.mubr.msk.f32.gmra.mrb[18].mxu0 %vm237_vm1, %v227_v27 }
  0x57   : > { %1553 = vmatprep.mubr.msk.f32.mxu0 %vm2251_vm0, %v2250_v0 }
  0x5a   : > { %1554 = vmatmul.mubr.msk.f32.gmra.mrb[20].mxu0 %vm237_vm1, %v228_v28 }
  0x5b   : > { %1556 = vmatprep.mubr.msk.f32.mxu0 %vm2251_vm0, %v2250_v0 }
  0x5e   : > { %1557 = vmatmul.mubr.msk.f32.gmra.mrb[22].mxu0 %vm237_vm1, %v229_v29 }
  0x5f   : > { %1559 = vmatprep.mubr.msk.f32.mxu0 %vm2251_vm0, %v2250_v0 }
  0x62   : > { %1560 = vmatmul.mubr.msk.f32.gmra.mrb[24].mxu0 %vm237_vm1, %v230_v30 }
  0x63   : > { %1665 = vmatprep.mubr.msk.f32.mxu0 %vm2251_vm0, %v2250_v0 }
 0x105   : > { %v343_v59 = vpop.f32.mrb[0].mxu0 }
 0x106   : > { %v344_v60 = vadd.f32 %v2417_v58, %v343_v59  ;;  %v1525_v61 = vpop.f32.mrb[1].mxu0  ;;  %v759_v59 = vld [vmem:[#allocation2 + $0x118] sm:$0xff] }
 0x107   : > { %v760_v61 = vld [vmem:[#allocation2 + $0x120] sm:$0xff] }
 0x108   : > { %2077 = vtanh.f32 %v344_v60  ;;  %v1969_v60 = vpack.c.bf16 %v759_v59, %v758_v57 }
 0x109   : > { %v348_v62 = vpop.f32.mrb[2].mxu0 }
 0x10a   : > { %v349_v63 = vadd.f32 %v2417_v58, %v348_v62  ;;  %v1528_v2 = vpop.f32.mrb[3].mxu0  ;;  %v761_v62 = vld [vmem:[#allocation2 + $0x128] sm:$0xff] }
 0x10b   : > { %v762_v2 = vld [vmem:[#allocation2 + $0x130] sm:$0xff] }
 0x10c   : > { %2079 = vtanh.f32 %v349_v63  ;;  %v1972_v63 = vpack.c.bf16 %v761_v62, %v760_v61 }
 0x10d   : > { %v353_v3 = vpop.f32.mrb[4].mxu0 }
 0x10e   : > { %v354_v4 = vadd.f32 %v2417_v58, %v353_v3  ;;  %v1531_v5 = vpop.f32.mrb[5].mxu0  ;;  %v763_v3 = vld [vmem:[#allocation2 + $0x138] sm:$0xff] }
 0x10f   : > { %v764_v5 = vld [vmem:[#allocation2 + $0x140] sm:$0xff] }
 0x110   : > { %2081 = vtanh.f32 %v354_v4  ;;  %v1975_v4 = vpack.c.bf16 %v763_v3, %v762_v2  ;;  %v768_v2 = vld [vmem:[#allocation2 + $0x160] sm:$0xff]  ;;  %v769_v3 = vld [vmem:[#allocation2 + $0x168] sm:$0xff] }
 0x111   : > { %v358_v6 = vpop.f32.mrb[6].mxu0 }
 0x112   : > { %v2078_v7 = vpop.eup %2077  ;;  %v359_v8 = vadd.f32 %v2417_v58, %v358_v6  ;;  %v1534_v9 = vpop.f32.mrb[7].mxu0  ;;  %v765_v6 = vld [vmem:[#allocation2 + $0x148] sm:$0xff] }
 0x113   : > { %1595 = vmatmul.mubr.f32.vlgmr.msra.gmra.mrb[0].mxu1 %v2078_v7  ;;  %v1978_v7 = vpack.c.bf16 %v765_v6, %v764_v5  ;;  %v767_v9 = vld [vmem:[#allocation2 + $0x158] sm:$0xff]  ;;  %v770_v5 = vld [vmem:[#allocation2 + $0x170] sm:$0xff] }
 0x114   : > { %2083 = vtanh.f32 %v359_v8  ;;  %1597 = vmatprep.mubr.msk.f32.mxu1 %vm2251_vm0, %v2250_v0  ;;  %v766_v8 = vld [vmem:[#allocation2 + $0x150] sm:$0xff]  ;;  %v771_v6 = vld [vmem:[#allocation2 + $0x178] sm:$0xff] }
 0x115   : > { %v363_v10 = vpop.f32.mrb[8].mxu0 }
 0x116   : > { %v2080_v11 = vpop.eup %2079  ;;  %v364_v12 = vadd.f32 %v2417_v58, %v363_v10  ;;  %v1537_v13 = vpop.f32.mrb[9].mxu0  ;;  %v1981_v10 = vpack.c.bf16 %v767_v9, %v766_v8  ;;  %v924_v8 = vld [vmem:[#allocation2 + $0x180] sm:$0xff]  ;;  %v925_v9 = vld [vmem:[#allocation2 + $0x188] sm:$0xff] }
 0x117   : > { %1598 = vmatmul.mubr.f32.gmra.mrb[2].mxu1 %v2080_v11  ;;  %v2469_v11 = vld [vmem:[%s2691_s3 + $0x1] ss:$0 sm:$0xff] }
 0x118   : > { %2085 = vtanh.f32 %v364_v12  ;;  %1600 = vmatprep.mubr.msk.f32.mxu1 %vm2251_vm0, %v2250_v0 }
 0x119   : > { %v368_v14 = vpop.f32.mrb[10].mxu0 }
 0x11a   : > { %v2082_v15 = vpop.eup %2081  ;;  %v369_v16 = vadd.f32 %v2417_v58, %v368_v14  ;;  %v1540_v17 = vpop.f32.mrb[11].mxu0 }
 0x11b   : > { %1601 = vmatmul.mubr.f32.gmra.mrb[4].mxu1 %v2082_v15 }
 0x11c   : > { %2087 = vtanh.f32 %v369_v16  ;;  %1603 = vmatprep.mubr.msk.f32.mxu1 %vm2251_vm0, %v2250_v0 }
 0x11d   : > { %v373_v18 = vpop.f32.mrb[12].mxu0 }
 0x11e   : > { %v2084_v19 = vpop.eup %2083  ;;  %v374_v20 = vadd.f32 %v2417_v58, %v373_v18  ;;  %v1543_v21 = vpop.f32.mrb[13].mxu0 }
 0x11f   : > { %1604 = vmatmul.mubr.f32.gmra.mrb[6].mxu1 %v2084_v19 }
 0x120   : > { %2089 = vtanh.f32 %v374_v20  ;;  %1606 = vmatprep.mubr.msk.f32.mxu1 %vm2251_vm0, %v2250_v0 }
 0x121   : > { %v378_v22 = vpop.f32.mrb[14].mxu0 }
 0x122   : > { %v2086_v23 = vpop.eup %2085  ;;  %v379_v24 = vadd.f32 %v2417_v58, %v378_v22  ;;  %v1546_v25 = vpop.f32.mrb[15].mxu0 }
 0x123   : > { %1607 = vmatmul.mubr.f32.gmra.mrb[8].mxu1 %v2086_v23 }
 0x124   : > { %2091 = vtanh.f32 %v379_v24  ;;  %1609 = vmatprep.mubr.msk.f32.mxu1 %vm2251_vm0, %v2250_v0 }
 0x125   : > { %v383_v26 = vpop.f32.mrb[16].mxu0 }
 0x126   : > { %v2088_v27 = vpop.eup %2087  ;;  %v384_v28 = vadd.f32 %v2417_v58, %v383_v26  ;;  %v1549_v29 = vpop.f32.mrb[17].mxu0 }
 0x127   : > { %1610 = vmatmul.mubr.f32.gmra.mrb[10].mxu1 %v2088_v27 }
 0x128   : > { %2093 = vtanh.f32 %v384_v28  ;;  %1612 = vmatprep.mubr.msk.f32.mxu1 %vm2251_vm0, %v2250_v0 }
 0x129   : > { %v388_v30 = vpop.f32.mrb[18].mxu0 }
 0x12a   : > { %v2090_v31 = vpop.eup %2089  ;;  %v389_v32 = vadd.f32 %v2417_v58, %v388_v30  ;;  %v1552_v33 = vpop.f32.mrb[19].mxu0 }
 0x12b   : > { %1613 = vmatmul.mubr.f32.gmra.mrb[12].mxu1 %v2090_v31 }
 0x12c   : > { %2095 = vtanh.f32 %v389_v32  ;;  %1615 = vmatprep.mubr.msk.f32.mxu1 %vm2251_vm0, %v2250_v0 }
 0x12d   : > { %v393_v34 = vpop.f32.mrb[20].mxu0 }
 0x12e   : > { %v2092_v35 = vpop.eup %2091  ;;  %v394_v36 = vadd.f32 %v2417_v58, %v393_v34  ;;  %v1555_v37 = vpop.f32.mrb[21].mxu0 }
 0x12f   : > { %1616 = vmatmul.mubr.f32.gmra.mrb[14].mxu1 %v2092_v35 }
 0x130   : > { %2097 = vtanh.f32 %v394_v36  ;;  %1618 = vmatprep.mubr.msk.f32.mxu1 %vm2251_vm0, %v2250_v0 }
 0x131   : > { %v398_v38 = vpop.f32.mrb[22].mxu0 }
 0x132   : > { %v2094_v39 = vpop.eup %2093  ;;  %v399_v40 = vadd.f32 %v2417_v58, %v398_v38  ;;  %v1558_v41 = vpop.f32.mrb[23].mxu0 }
 0x133   : > { %1619 = vmatmul.mubr.f32.gmra.mrb[16].mxu1 %v2094_v39 }
 0x134   : > { %2099 = vtanh.f32 %v399_v40  ;;  %1621 = vmatprep.mubr.msk.f32.mxu1 %vm2251_vm0, %v2250_v0 }
 0x135   : > { %v403_v42 = vpop.f32.mrb[24].mxu0 }
 0x136   : > { %v2096_v43 = vpop.eup %2095  ;;  %v404_v44 = vadd.f32 %v2417_v58, %v403_v42  ;;  %v1561_v45 = vpop.f32.mrb[25].mxu0  ;;  %v1966_v58 = vpack.c.bf16 %v757_v56, %v756_v55 }
 0x137   : > { %1622 = vmatmul.mubr.f32.gmra.mrb[18].mxu1 %v2096_v43 }
 0x138   : > { %2101 = vtanh.f32 %v404_v44  ;;  %1624 = vmatprep.mubr.msk.f32.mxu1 %vm2251_vm0, %v2250_v0  ;;  %1967 = vmatpush3.bf16.msra.mxu1 %v1966_v58 }
 0x139   : > { %1968 = vmatprep.subr.bf16.mxu1 %v2252_v1 }
 0x13a   : > { %v2098_v46 = vpop.eup %2097 }
 0x13b   : > { %1625 = vmatmul.mubr.f32.gmra.mrb[20].mxu1 %v2098_v46 }
 0x13c   : > { %1627 = vmatprep.mubr.msk.f32.mxu1 %vm2251_vm0, %v2250_v0  ;;  %1970 = vmatpush3.bf16.msra.mxu1 %v1969_v60 }
 0x13d   : > { %1971 = vmatprep.subr.bf16.mxu1 %v2252_v1 }
 0x13e   : > { %v2100_v47 = vpop.eup %2099 }
 0x13f   : > { %1628 = vmatmul.mubr.f32.gmra.mrb[22].mxu1 %v2100_v47 }
 0x140   : > { %1630 = vmatprep.mubr.msk.f32.mxu1 %vm2251_vm0, %v2250_v0  ;;  %1973 = vmatpush3.bf16.msra.mxu1 %v1972_v63 }
 0x141   : > { %1974 = vmatprep.subr.bf16.mxu1 %v2252_v1 }
 0x142   : > { %v2102_v48 = vpop.eup %2101 }
 0x143   : > { %1631 = vmatmul.mubr.f32.gmra.mrb[24].mxu1 %v2102_v48 }
 0x144   : > { %1736 = vmatprep.mubr.msk.f32.mxu1 %vm2251_vm0, %v2250_v0  ;;  %1976 = vmatpush3.bf16.msra.mxu1 %v1975_v4  ;;  %v1984_v4 = vpack.c.bf16 %v769_v3, %v768_v2 }
 0x145   : > { %1977 = vmatprep.subr.bf16.mxu1 %v2252_v1 }
 0x148   : > { %1979 = vmatpush3.bf16.msra.mxu1 %v1978_v7  ;;  %v1987_v7 = vpack.c.bf16 %v771_v6, %v770_v5 }
 0x149   : > { %1980 = vmatprep.subr.bf16.mxu1 %v2252_v1 }
 0x14c   : > { %1982 = vmatpush3.bf16.msra.mxu1 %v1981_v10  ;;  %v926_v10 = vld [vmem:[#allocation2 + $0x190] sm:$0xff] }
 0x14d   : > { %1983 = vmatprep.subr.bf16.mxu1 %v2252_v1 }
 0x150   : > { %1985 = vmatpush3.bf16.msra.mxu1 %v1984_v4 }
 0x151   : > { %1986 = vmatprep.subr.bf16.mxu1 %v2252_v1 }
 0x154   : > { %1988 = vmatpush3.bf16.msra.mxu1 %v1987_v7 }
 0x155   : > { %2037 = vmatprep.subr.bf16.mxu1 %v2252_v1 }
 0x1e6   : > { %v510_v12 = vpop.f32.mrb[0].mxu1 }
 0x1e7   : > { %v511_v13 = vadd.f32 %v2469_v11, %v510_v12  ;;  %v1596_v14 = vpop.f32.mrb[1].mxu1  ;;  %v927_v12 = vld [vmem:[#allocation2 + $0x198] sm:$0xff] }
 0x1e8   : > { %v928_v14 = vld [vmem:[#allocation2 + $0x1a0] sm:$0xff] }
 0x1e9   : > { %2103 = vtanh.f32 %v511_v13  ;;  %v1993_v13 = vpack.c.bf16 %v927_v12, %v926_v10 }
 0x1ea   : > { %v515_v15 = vpop.f32.mrb[2].mxu1 }
 0x1eb   : > { %v516_v16 = vadd.f32 %v2469_v11, %v515_v15  ;;  %v1599_v17 = vpop.f32.mrb[3].mxu1  ;;  %v929_v15 = vld [vmem:[#allocation2 + $0x1a8] sm:$0xff] }
 0x1ec   : > { %v930_v17 = vld [vmem:[#allocation2 + $0x1b0] sm:$0xff] }
 0x1ed   : > { %2105 = vtanh.f32 %v516_v16  ;;  %v1996_v16 = vpack.c.bf16 %v929_v15, %v928_v14 }
 0x1ee   : > { %v520_v18 = vpop.f32.mrb[4].mxu1 }
 0x1ef   : > { %v521_v19 = vadd.f32 %v2469_v11, %v520_v18  ;;  %v1602_v20 = vpop.f32.mrb[5].mxu1  ;;  %v931_v18 = vld [vmem:[#allocation2 + $0x1b8] sm:$0xff] }
 0x1f0   : > { %v932_v20 = vld [vmem:[#allocation2 + $0x1c0] sm:$0xff] }
 0x1f1   : > { %2107 = vtanh.f32 %v521_v19  ;;  %v1999_v19 = vpack.c.bf16 %v931_v18, %v930_v17  ;;  %v936_v17 = vld [vmem:[#allocation2 + $0x1e0] sm:$0xff]  ;;  %v937_v18 = vld [vmem:[#allocation2 + $0x1e8] sm:$0xff] }
 0x1f2   : > { %v525_v21 = vpop.f32.mrb[6].mxu1 }
 0x1f3   : > { %v2104_v22 = vpop.eup %2103  ;;  %v526_v23 = vadd.f32 %v2469_v11, %v525_v21  ;;  %v1605_v24 = vpop.f32.mrb[7].mxu1  ;;  %v933_v21 = vld [vmem:[#allocation2 + $0x1c8] sm:$0xff] }
 0x1f4   : > { %1666 = vmatmul.mubr.f32.vlgmr.msra.gmra.mrb[26].mxu0 %v2104_v22  ;;  %v2002_v22 = vpack.c.bf16 %v933_v21, %v932_v20  ;;  %v935_v24 = vld [vmem:[#allocation2 + $0x1d8] sm:$0xff]  ;;  %v938_v20 = vld [vmem:[#allocation2 + $0x1f0] sm:$0xff] }
 0x1f5   : > { %2109 = vtanh.f32 %v526_v23  ;;  %1668 = vmatprep.mubr.msk.f32.mxu0 %vm2251_vm0, %v2250_v0  ;;  %v934_v23 = vld [vmem:[#allocation2 + $0x1d0] sm:$0xff]  ;;  %v939_v21 = vld [vmem:[#allocation2 + $0x1f8] sm:$0xff] }
 0x1f6   : > { %v530_v25 = vpop.f32.mrb[8].mxu1 }
 0x1f7   : > { %v2106_v26 = vpop.eup %2105  ;;  %v531_v27 = vadd.f32 %v2469_v11, %v530_v25  ;;  %v1608_v28 = vpop.f32.mrb[9].mxu1  ;;  %v2005_v25 = vpack.c.bf16 %v935_v24, %v934_v23  ;;  %v1092_v23 = vld [vmem:[#allocation2 + $0x200] sm:$0xff]  ;;  %v1093_v24 = vld [vmem:[#allocation2 + $0x208] sm:$0xff] }
 0x1f8   : > { %1669 = vmatmul.mubr.f32.gmra.mrb[28].mxu0 %v2106_v26  ;;  %v2521_v26 = vld [vmem:[%s2691_s3 + $0x2] ss:$0 sm:$0xff] }
 0x1f9   : > { %2111 = vtanh.f32 %v531_v27  ;;  %1671 = vmatprep.mubr.msk.f32.mxu0 %vm2251_vm0, %v2250_v0 }
 0x1fa   : > { %v535_v29 = vpop.f32.mrb[10].mxu1 }
 0x1fb   : > { %v2108_v30 = vpop.eup %2107  ;;  %v536_v31 = vadd.f32 %v2469_v11, %v535_v29  ;;  %v1611_v32 = vpop.f32.mrb[11].mxu1 }
 0x1fc   : > { %1672 = vmatmul.mubr.f32.gmra.mrb[30].mxu0 %v2108_v30 }
 0x1fd   : > { %2113 = vtanh.f32 %v536_v31  ;;  %1674 = vmatprep.mubr.msk.f32.mxu0 %vm2251_vm0, %v2250_v0 }
 0x1fe   : > { %v540_v33 = vpop.f32.mrb[12].mxu1 }
 0x1ff   : > { %v2110_v34 = vpop.eup %2109  ;;  %v541_v35 = vadd.f32 %v2469_v11, %v540_v33  ;;  %v1614_v36 = vpop.f32.mrb[13].mxu1 }
 0x200   : > { %1675 = vmatmul.mubr.f32.gmra.mrb[32].mxu0 %v2110_v34 }
 0x201   : > { %2115 = vtanh.f32 %v541_v35  ;;  %1677 = vmatprep.mubr.msk.f32.mxu0 %vm2251_vm0, %v2250_v0 }
 0x202   : > { %v545_v37 = vpop.f32.mrb[14].mxu1 }
 0x203   : > { %v2112_v38 = vpop.eup %2111  ;;  %v546_v39 = vadd.f32 %v2469_v11, %v545_v37  ;;  %v1617_v40 = vpop.f32.mrb[15].mxu1 }
 0x204   : > { %1678 = vmatmul.mubr.f32.gmra.mrb[34].mxu0 %v2112_v38 }
 0x205   : > { %2117 = vtanh.f32 %v546_v39  ;;  %1680 = vmatprep.mubr.msk.f32.mxu0 %vm2251_vm0, %v2250_v0 }
 0x206   : > { %v550_v41 = vpop.f32.mrb[16].mxu1 }
 0x207   : > { %v2114_v42 = vpop.eup %2113  ;;  %v551_v43 = vadd.f32 %v2469_v11, %v550_v41  ;;  %v1620_v44 = vpop.f32.mrb[17].mxu1 }
 0x208   : > { %1681 = vmatmul.mubr.f32.gmra.mrb[36].mxu0 %v2114_v42 }
 0x209   : > { %2119 = vtanh.f32 %v551_v43  ;;  %1683 = vmatprep.mubr.msk.f32.mxu0 %vm2251_vm0, %v2250_v0 }
 0x20a   : > { %v555_v45 = vpop.f32.mrb[18].mxu1 }
 0x20b   : > { %v2116_v46 = vpop.eup %2115  ;;  %v556_v47 = vadd.f32 %v2469_v11, %v555_v45  ;;  %v1623_v48 = vpop.f32.mrb[19].mxu1 }
 0x20c   : > { %1684 = vmatmul.mubr.f32.gmra.mrb[38].mxu0 %v2116_v46 }
 0x20d   : > { %2121 = vtanh.f32 %v556_v47  ;;  %1686 = vmatprep.mubr.msk.f32.mxu0 %vm2251_vm0, %v2250_v0 }
 0x20e   : > { %v560_v49 = vpop.f32.mrb[20].mxu1 }
 0x20f   : > { %v2118_v50 = vpop.eup %2117  ;;  %v561_v51 = vadd.f32 %v2469_v11, %v560_v49  ;;  %v1626_v52 = vpop.f32.mrb[21].mxu1 }
 0x210   : > { %1687 = vmatmul.mubr.f32.gmra.mrb[40].mxu0 %v2118_v50 }
 0x211   : > { %2123 = vtanh.f32 %v561_v51  ;;  %1689 = vmatprep.mubr.msk.f32.mxu0 %vm2251_vm0, %v2250_v0 }
 0x212   : > { %v565_v53 = vpop.f32.mrb[22].mxu1 }
 0x213   : > { %v2120_v54 = vpop.eup %2119  ;;  %v566_v55 = vadd.f32 %v2469_v11, %v565_v53  ;;  %v1629_v56 = vpop.f32.mrb[23].mxu1 }
 0x214   : > { %1690 = vmatmul.mubr.f32.gmra.mrb[42].mxu0 %v2120_v54 }
 0x215   : > { %2125 = vtanh.f32 %v566_v55  ;;  %1692 = vmatprep.mubr.msk.f32.mxu0 %vm2251_vm0, %v2250_v0 }
 0x216   : > { %v570_v57 = vpop.f32.mrb[24].mxu1 }
 0x217   : > { %v2122_v58 = vpop.eup %2121  ;;  %v571_v59 = vadd.f32 %v2469_v11, %v570_v57  ;;  %v1632_v60 = vpop.f32.mrb[25].mxu1  ;;  %v1990_v11 = vpack.c.bf16 %v925_v9, %v924_v8 }
 0x218   : > { %1693 = vmatmul.mubr.f32.gmra.mrb[44].mxu0 %v2122_v58 }
 0x219   : > { %2127 = vtanh.f32 %v571_v59  ;;  %1695 = vmatprep.mubr.msk.f32.mxu0 %vm2251_vm0, %v2250_v0  ;;  %1991 = vmatpush3.bf16.msra.mxu0 %v1990_v11 }
 0x21a   : > { %1992 = vmatprep.subr.bf16.mxu0 %v2252_v1 }
 0x21b   : > { %v2124_v61 = vpop.eup %2123 }
 0x21c   : > { %1696 = vmatmul.mubr.f32.gmra.mrb[46].mxu0 %v2124_v61 }
 0x21d   : > { %1698 = vmatprep.mubr.msk.f32.mxu0 %vm2251_vm0, %v2250_v0  ;;  %1994 = vmatpush3.bf16.msra.mxu0 %v1993_v13 }
 0x21e   : > { %1995 = vmatprep.subr.bf16.mxu0 %v2252_v1 }
 0x21f   : > { %v2126_v62 = vpop.eup %2125 }
 0x220   : > { %1699 = vmatmul.mubr.f32.gmra.mrb[48].mxu0 %v2126_v62 }
 0x221   : > { %1701 = vmatprep.mubr.msk.f32.mxu0 %vm2251_vm0, %v2250_v0  ;;  %1997 = vmatpush3.bf16.msra.mxu0 %v1996_v16 }
 0x222   : > { %1998 = vmatprep.subr.bf16.mxu0 %v2252_v1 }
 0x223   : > { %v2128_v63 = vpop.eup %2127 }
 0x224   : > { %1702 = vmatmul.mubr.f32.gmra.mrb[50].mxu0 %v2128_v63 }
 0x225   : > { %1807 = vmatprep.mubr.msk.f32.mxu0 %vm2251_vm0, %v2250_v0  ;;  %2000 = vmatpush3.bf16.msra.mxu0 %v1999_v19  ;;  %v2008_v19 = vpack.c.bf16 %v937_v18, %v936_v17 }
 0x226   : > { %2001 = vmatprep.subr.bf16.mxu0 %v2252_v1 }
 0x229   : > { %2003 = vmatpush3.bf16.msra.mxu0 %v2002_v22  ;;  %v2011_v22 = vpack.c.bf16 %v939_v21, %v938_v20 }
 0x22a   : > { %2004 = vmatprep.subr.bf16.mxu0 %v2252_v1 }
 0x22d   : > { %2006 = vmatpush3.bf16.msra.mxu0 %v2005_v25  ;;  %v2014_v25 = vpack.c.bf16 %v1093_v24, %v1092_v23 }
 0x22e   : > { %2007 = vmatprep.subr.bf16.mxu0 %v2252_v1 }
 0x231   : > { %2009 = vmatpush3.bf16.msra.mxu0 %v2008_v19 }
 0x232   : > { %2010 = vmatprep.subr.bf16.mxu0 %v2252_v1 }
 0x235   : > { %2012 = vmatpush3.bf16.msra.mxu0 %v2011_v22 }
 0x236   : > { %2013 = vmatprep.subr.bf16.mxu0 %v2252_v1 }
 0x2c7   : > { %v678_v27 = vpop.f32.mrb[26].mxu0 }
 0x2c8   : > { %v679_v28 = vadd.f32 %v2521_v26, %v678_v27  ;;  %v1667_v29 = vpop.f32.mrb[27].mxu0  ;;  %v1095_v27 = vld [vmem:[#allocation2 + $0x218] sm:$0xff] }
 0x2c9   : > { %v1096_v29 = vld [vmem:[#allocation2 + $0x220] sm:$0xff] }
 0x2ca   : > { %2129 = vtanh.f32 %v679_v28 }
 0x2cb   : > { %v683_v30 = vpop.f32.mrb[28].mxu0 }
 0x2cc   : > { %v684_v31 = vadd.f32 %v2521_v26, %v683_v30  ;;  %v1670_v32 = vpop.f32.mrb[29].mxu0  ;;  %v1097_v30 = vld [vmem:[#allocation2 + $0x228] sm:$0xff] }
 0x2cd   : > { %v1098_v32 = vld [vmem:[#allocation2 + $0x230] sm:$0xff] }
 0x2ce   : > { %2131 = vtanh.f32 %v684_v31  ;;  %v2020_v31 = vpack.c.bf16 %v1097_v30, %v1096_v29  ;;  %v1102_v29 = vld [vmem:[#allocation2 + $0x250] sm:$0xff]  ;;  %v1103_v30 = vld [vmem:[#allocation2 + $0x258] sm:$0xff] }
 0x2cf   : > { %v688_v33 = vpop.f32.mrb[30].mxu0 }
 0x2d0   : > { %v689_v34 = vadd.f32 %v2521_v26, %v688_v33  ;;  %v1673_v35 = vpop.f32.mrb[31].mxu0  ;;  %v1099_v33 = vld [vmem:[#allocation2 + $0x238] sm:$0xff] }
 0x2d1   : > { %v1100_v35 = vld [vmem:[#allocation2 + $0x240] sm:$0xff] }
 0x2d2   : > { %2133 = vtanh.f32 %v689_v34  ;;  %v2023_v34 = vpack.c.bf16 %v1099_v33, %v1098_v32  ;;  %v1104_v32 = vld [vmem:[#allocation2 + $0x260] sm:$0xff]  ;;  %v1105_v33 = vld [vmem:[#allocation2 + $0x268] sm:$0xff] }
 0x2d3   : > { %v693_v36 = vpop.f32.mrb[32].mxu0 }
 0x2d4   : > { %v2130_v37 = vpop.eup %2129  ;;  %v694_v38 = vadd.f32 %v2521_v26, %v693_v36  ;;  %v1676_v39 = vpop.f32.mrb[33].mxu0  ;;  %v1101_v36 = vld [vmem:[#allocation2 + $0x248] sm:$0xff] }
 0x2d5   : > { %1737 = vmatmul.mubr.f32.vlgmr.msra.gmra.mrb[26].mxu1 %v2130_v37  ;;  %v2026_v37 = vpack.c.bf16 %v1101_v36, %v1100_v35  ;;  %v1106_v35 = vld [vmem:[#allocation2 + $0x270] sm:$0xff]  ;;  %v1107_v36 = vld [vmem:[#allocation2 + $0x278] sm:$0xff] }
 0x2d6   : > { %2135 = vtanh.f32 %v694_v38  ;;  %1739 = vmatprep.mubr.msk.f32.mxu1 %vm2251_vm0, %v2250_v0  ;;  %2045 = vmatpush3.bf16.msra.mxu1 %v2014_v25  ;;  %v2572_v38 = vld [vmem:[%s2691_s3 + $0x3] ss:$0 sm:$0xff] }
 0x2d7   : > { %v698_v40 = vpop.f32.mrb[34].mxu0  ;;  %2038 = vmatprep.subr.bf16.mxu1 %v2252_v1 }
 0x2d8   : > { %v2132_v41 = vpop.eup %2131  ;;  %v699_v42 = vadd.f32 %v2521_v26, %v698_v40  ;;  %v1679_v43 = vpop.f32.mrb[35].mxu0 }
 0x2d9   : > { %1740 = vmatmul.mubr.f32.gmra.mrb[28].mxu1 %v2132_v41 }
 0x2da   : > { %2137 = vtanh.f32 %v699_v42  ;;  %1742 = vmatprep.mubr.msk.f32.mxu1 %vm2251_vm0, %v2250_v0 }
 0x2db   : > { %v703_v44 = vpop.f32.mrb[36].mxu0 }
 0x2dc   : > { %v2134_v45 = vpop.eup %2133  ;;  %v704_v46 = vadd.f32 %v2521_v26, %v703_v44  ;;  %v1682_v47 = vpop.f32.mrb[37].mxu0 }
 0x2dd   : > { %1743 = vmatmul.mubr.f32.gmra.mrb[30].mxu1 %v2134_v45 }
 0x2de   : > { %2139 = vtanh.f32 %v704_v46  ;;  %1745 = vmatprep.mubr.msk.f32.mxu1 %vm2251_vm0, %v2250_v0 }
 0x2df   : > { %v708_v48 = vpop.f32.mrb[38].mxu0 }
 0x2e0   : > { %v2136_v49 = vpop.eup %2135  ;;  %v709_v50 = vadd.f32 %v2521_v26, %v708_v48  ;;  %v1685_v51 = vpop.f32.mrb[39].mxu0 }
 0x2e1   : > { %1746 = vmatmul.mubr.f32.gmra.mrb[32].mxu1 %v2136_v49 }
 0x2e2   : > { %2141 = vtanh.f32 %v709_v50  ;;  %1748 = vmatprep.mubr.msk.f32.mxu1 %vm2251_vm0, %v2250_v0 }
 0x2e3   : > { %v713_v52 = vpop.f32.mrb[40].mxu0 }
 0x2e4   : > { %v2138_v53 = vpop.eup %2137  ;;  %v714_v54 = vadd.f32 %v2521_v26, %v713_v52  ;;  %v1688_v55 = vpop.f32.mrb[41].mxu0 }
 0x2e5   : > { %1749 = vmatmul.mubr.f32.gmra.mrb[34].mxu1 %v2138_v53 }
 0x2e6   : > { %2143 = vtanh.f32 %v714_v54  ;;  %1751 = vmatprep.mubr.msk.f32.mxu1 %vm2251_vm0, %v2250_v0 }
 0x2e7   : > { %v718_v56 = vpop.f32.mrb[42].mxu0 }
 0x2e8   : > { %v2140_v57 = vpop.eup %2139  ;;  %v719_v58 = vadd.f32 %v2521_v26, %v718_v56  ;;  %v1691_v59 = vpop.f32.mrb[43].mxu0 }
 0x2e9   : > { %1752 = vmatmul.mubr.f32.gmra.mrb[36].mxu1 %v2140_v57 }
 0x2ea   : > { %2145 = vtanh.f32 %v719_v58  ;;  %1754 = vmatprep.mubr.msk.f32.mxu1 %vm2251_vm0, %v2250_v0 }
 0x2eb   : > { %v723_v60 = vpop.f32.mrb[44].mxu0 }
 0x2ec   : > { %v2142_v61 = vpop.eup %2141  ;;  %v724_v62 = vadd.f32 %v2521_v26, %v723_v60  ;;  %v1694_v63 = vpop.f32.mrb[45].mxu0 }
 0x2ed   : > { %1755 = vmatmul.mubr.f32.gmra.mrb[38].mxu1 %v2142_v61 }
 0x2ee   : > { %2147 = vtanh.f32 %v724_v62  ;;  %1757 = vmatprep.mubr.msk.f32.mxu1 %vm2251_vm0, %v2250_v0 }
 0x2ef   : > { %v728_v2 = vpop.f32.mrb[46].mxu0 }
 0x2f0   : > { %v2144_v3 = vpop.eup %2143  ;;  %v729_v4 = vadd.f32 %v2521_v26, %v728_v2  ;;  %v1697_v5 = vpop.f32.mrb[47].mxu0 }
 0x2f1   : > { %1758 = vmatmul.mubr.f32.gmra.mrb[40].mxu1 %v2144_v3 }
 0x2f2   : > { %2149 = vtanh.f32 %v729_v4  ;;  %1760 = vmatprep.mubr.msk.f32.mxu1 %vm2251_vm0, %v2250_v0 }
 0x2f3   : > { %v733_v6 = vpop.f32.mrb[48].mxu0 }
 0x2f4   : > { %v2146_v7 = vpop.eup %2145  ;;  %v734_v8 = vadd.f32 %v2521_v26, %v733_v6  ;;  %v1700_v9 = vpop.f32.mrb[49].mxu0 }
 0x2f5   : > { %1761 = vmatmul.mubr.f32.gmra.mrb[42].mxu1 %v2146_v7 }
 0x2f6   : > { %2151 = vtanh.f32 %v734_v8  ;;  %1763 = vmatprep.mubr.msk.f32.mxu1 %vm2251_vm0, %v2250_v0 }
 0x2f7   : > { %v738_v10 = vpop.f32.mrb[50].mxu0 }
 0x2f8   : > { %v2148_v11 = vpop.eup %2147  ;;  %v739_v12 = vadd.f32 %v2521_v26, %v738_v10  ;;  %v1703_v13 = vpop.f32.mrb[51].mxu0  ;;  %v1094_v26 = vld [vmem:[#allocation2 + $0x210] sm:$0xff] }
 0x2f9   : > { %1764 = vmatmul.mubr.f32.gmra.mrb[44].mxu1 %v2148_v11  ;;  %v2017_v28 = vpack.c.bf16 %v1095_v27, %v1094_v26 }
 0x2fa   : > { %2153 = vtanh.f32 %v739_v12  ;;  %1766 = vmatprep.mubr.msk.f32.mxu1 %vm2251_vm0, %v2250_v0 }
 0x2fb   : > { %2046 = vmatpush3.bf16.msra.mxu1 %v2017_v28 }
 0x2fc   : > { %v2150_v14 = vpop.eup %2149  ;;  %2039 = vmatprep.subr.bf16.mxu1 %v2252_v1 }
 0x2fd   : > { %1767 = vmatmul.mubr.f32.gmra.mrb[46].mxu1 %v2150_v14 }
 0x2fe   : > { %1769 = vmatprep.mubr.msk.f32.mxu1 %vm2251_vm0, %v2250_v0 }
 0x2ff   : > { %2047 = vmatpush3.bf16.msra.mxu1 %v2020_v31 }
 0x300   : > { %v2152_v15 = vpop.eup %2151  ;;  %2040 = vmatprep.subr.bf16.mxu1 %v2252_v1 }
 0x301   : > { %1770 = vmatmul.mubr.f32.gmra.mrb[48].mxu1 %v2152_v15 }
 0x302   : > { %1772 = vmatprep.mubr.msk.f32.mxu1 %vm2251_vm0, %v2250_v0 }
 0x303   : > { %2048 = vmatpush3.bf16.msra.mxu1 %v2023_v34 }
 0x304   : > { %v2154_v16 = vpop.eup %2153  ;;  %2041 = vmatprep.subr.bf16.mxu1 %v2252_v1 }
 0x305   : > { %1773 = vmatmul.mubr.f32.gmra.mrb[50].mxu1 %v2154_v16 }
 0x306   : > { %1887 = vmatprep.mubr.msk.f32.mxu1 %vm2251_vm0, %v2250_v0 }
 0x307   : > { %2049 = vmatpush3.bf16.msra.mxu1 %v2026_v37 }
 0x308   : > { %2042 = vmatprep.subr.bf16.mxu1 %v2252_v1 }
 0x3a8   : > { %v846_v39 = vpop.f32.mrb[26].mxu1 }
 0x3a9   : > { %v847_v40 = vadd.f32 %v2572_v38, %v846_v39  ;;  %v1738_v41 = vpop.f32.mrb[27].mxu1 }
 0x3ab   : > { %2155 = vtanh.f32 %v847_v40 }
 0x3ac   : > { %v851_v42 = vpop.f32.mrb[28].mxu1 }
 0x3ad   : > { %v852_v43 = vadd.f32 %v2572_v38, %v851_v42  ;;  %v1741_v44 = vpop.f32.mrb[29].mxu1 }
 0x3af   : > { %2157 = vtanh.f32 %v852_v43 }
 0x3b0   : > { %v856_v45 = vpop.f32.mrb[30].mxu1 }
 0x3b1   : > { %v857_v46 = vadd.f32 %v2572_v38, %v856_v45  ;;  %v1744_v47 = vpop.f32.mrb[31].mxu1 }
 0x3b3   : > { %2159 = vtanh.f32 %v857_v46 }
 0x3b4   : > { %v861_v48 = vpop.f32.mrb[32].mxu1 }
 0x3b5   : > { %v2156_v49 = vpop.eup %2155  ;;  %v862_v50 = vadd.f32 %v2572_v38, %v861_v48  ;;  %v1747_v51 = vpop.f32.mrb[33].mxu1 }
 0x3b6   : > { %1808 = vmatmul.mubr.f32.vlgmr.msra.gmra.mrb[52].mxu0 %v2156_v49 }
 0x3b7   : > { %2161 = vtanh.f32 %v862_v50  ;;  %1810 = vmatprep.mubr.msk.f32.mxu0 %vm2251_vm0, %v2250_v0  ;;  %2015 = vmatpush3.bf16.msra.mxu0 %v2014_v25 }
 0x3b8   : > { %v866_v52 = vpop.f32.mrb[34].mxu1  ;;  %2016 = vmatprep.subr.bf16.mxu0 %v2252_v1 }
 0x3b9   : > { %v2158_v53 = vpop.eup %2157  ;;  %v867_v54 = vadd.f32 %v2572_v38, %v866_v52  ;;  %v1750_v55 = vpop.f32.mrb[35].mxu1 }
 0x3ba   : > { %1811 = vmatmul.mubr.f32.gmra.mrb[54].mxu0 %v2158_v53 }
 0x3bb   : > { %2163 = vtanh.f32 %v867_v54  ;;  %1813 = vmatprep.mubr.msk.f32.mxu0 %vm2251_vm0, %v2250_v0  ;;  %2018 = vmatpush3.bf16.msra.mxu0 %v2017_v28 }
 0x3bc   : > { %v871_v56 = vpop.f32.mrb[36].mxu1  ;;  %2019 = vmatprep.subr.bf16.mxu0 %v2252_v1 }
 0x3bd   : > { %v2160_v57 = vpop.eup %2159  ;;  %v872_v58 = vadd.f32 %v2572_v38, %v871_v56  ;;  %v1753_v59 = vpop.f32.mrb[37].mxu1 }
 0x3be   : > { %1814 = vmatmul.mubr.f32.gmra.mrb[56].mxu0 %v2160_v57 }
 0x3bf   : > { %2165 = vtanh.f32 %v872_v58  ;;  %1816 = vmatprep.mubr.msk.f32.mxu0 %vm2251_vm0, %v2250_v0  ;;  %2021 = vmatpush3.bf16.msra.mxu0 %v2020_v31  ;;  %v2029_v31 = vpack.c.bf16 %v1103_v30, %v1102_v29 }
 0x3c0   : > { %v876_v60 = vpop.f32.mrb[38].mxu1  ;;  %2022 = vmatprep.subr.bf16.mxu0 %v2252_v1 }
 0x3c1   : > { %v2162_v61 = vpop.eup %2161  ;;  %v877_v62 = vadd.f32 %v2572_v38, %v876_v60  ;;  %v1756_v63 = vpop.f32.mrb[39].mxu1  ;;  %2050 = vmatpush3.bf16.msra.mxu1 %v2029_v31 }
 0x3c2   : > { %1817 = vmatmul.mubr.f32.gmra.mrb[58].mxu0 %v2162_v61  ;;  %2043 = vmatprep.subr.bf16.mxu1 %v2252_v1 }
 0x3c3   : > { %2167 = vtanh.f32 %v877_v62  ;;  %1819 = vmatprep.mubr.msk.f32.mxu0 %vm2251_vm0, %v2250_v0  ;;  %2024 = vmatpush3.bf16.msra.mxu0 %v2023_v34  ;;  %v2032_v34 = vpack.c.bf16 %v1105_v33, %v1104_v32 }
 0x3c4   : > { %v881_v2 = vpop.f32.mrb[40].mxu1  ;;  %2025 = vmatprep.subr.bf16.mxu0 %v2252_v1 }
 0x3c5   : > { %v2164_v3 = vpop.eup %2163  ;;  %v882_v4 = vadd.f32 %v2572_v38, %v881_v2  ;;  %v1759_v5 = vpop.f32.mrb[41].mxu1  ;;  %2051 = vmatpush3.bf16.msra.mxu1 %v2032_v34 }
 0x3c6   : > { %1820 = vmatmul.mubr.f32.gmra.mrb[60].mxu0 %v2164_v3  ;;  %2044 = vmatprep.subr.bf16.mxu1 %v2252_v1 }
 0x3c7   : > { %2169 = vtanh.f32 %v882_v4  ;;  %1822 = vmatprep.mubr.msk.f32.mxu0 %vm2251_vm0, %v2250_v0  ;;  %2027 = vmatpush3.bf16.msra.mxu0 %v2026_v37  ;;  %v2035_v37 = vpack.c.bf16 %v1107_v36, %v1106_v35 }
 0x3c8   : > { %v886_v6 = vpop.f32.mrb[42].mxu1  ;;  %2028 = vmatprep.subr.bf16.mxu0 %v2252_v1 }
 0x3c9   : > { %v2166_v7 = vpop.eup %2165  ;;  %v887_v8 = vadd.f32 %v2572_v38, %v886_v6  ;;  %v1762_v9 = vpop.f32.mrb[43].mxu1  ;;  %2052 = vmatpush3.bf16.msra.mxu1 %v2035_v37 }
 0x3ca   : > { %1823 = vmatmul.mubr.f32.gmra.mrb[62].mxu0 %v2166_v7 }
 0x3cb   : > { %2171 = vtanh.f32 %v887_v8  ;;  %1825 = vmatprep.mubr.msk.f32.mxu0 %vm2251_vm0, %v2250_v0  ;;  %2030 = vmatpush3.bf16.msra.mxu0 %v2029_v31 }
 0x3cc   : > { %v891_v10 = vpop.f32.mrb[44].mxu1  ;;  %2031 = vmatprep.subr.bf16.mxu0 %v2252_v1 }
 0x3cd   : > { %v2168_v11 = vpop.eup %2167  ;;  %v892_v12 = vadd.f32 %v2572_v38, %v891_v10  ;;  %v1765_v13 = vpop.f32.mrb[45].mxu1 }
 0x3ce   : > { %1826 = vmatmul.mubr.f32.gmra.mrb[64].mxu0 %v2168_v11 }
 0x3cf   : > { %2173 = vtanh.f32 %v892_v12  ;;  %1828 = vmatprep.mubr.msk.f32.mxu0 %vm2251_vm0, %v2250_v0  ;;  %2033 = vmatpush3.bf16.msra.mxu0 %v2032_v34 }
 0x3d0   : > { %v896_v14 = vpop.f32.mrb[46].mxu1  ;;  %2034 = vmatprep.subr.bf16.mxu0 %v2252_v1 }
 0x3d1   : > { %v2170_v15 = vpop.eup %2169  ;;  %v897_v16 = vadd.f32 %v2572_v38, %v896_v14  ;;  %v1768_v17 = vpop.f32.mrb[47].mxu1 }
 0x3d2   : > { %1829 = vmatmul.mubr.f32.gmra.mrb[66].mxu0 %v2170_v15 }
 0x3d3   : > { %2175 = vtanh.f32 %v897_v16  ;;  %1831 = vmatprep.mubr.msk.f32.mxu0 %vm2251_vm0, %v2250_v0  ;;  %2036 = vmatpush3.bf16.msra.mxu0 %v2035_v37 }
 0x3d4   : > { %v901_v18 = vpop.f32.mrb[48].mxu1 }
 0x3d5   : > { %v2172_v19 = vpop.eup %2171  ;;  %v902_v20 = vadd.f32 %v2572_v38, %v901_v18  ;;  %v1771_v21 = vpop.f32.mrb[49].mxu1 }
 0x3d6   : > { %1832 = vmatmul.mubr.f32.gmra.mrb[68].mxu0 %v2172_v19 }
 0x3d7   : > { %2177 = vtanh.f32 %v902_v20  ;;  %1834 = vmatprep.mubr.msk.f32.mxu0 %vm2251_vm0, %v2250_v0 }
 0x3d8   : > { %v906_v22 = vpop.f32.mrb[50].mxu1 }
 0x3d9   : > { %v2174_v23 = vpop.eup %2173  ;;  %v907_v24 = vadd.f32 %v2572_v38, %v906_v22  ;;  %v1774_v25 = vpop.f32.mrb[51].mxu1  ;;  %v2625_v38 = vld [vmem:[%s2691_s3 + $0x4] ss:$0 sm:$0xff] }
 0x3da   : > { %1835 = vmatmul.mubr.f32.gmra.mrb[70].mxu0 %v2174_v23 }
 0x3db   : > { %2179 = vtanh.f32 %v907_v24  ;;  %1837 = vmatprep.mubr.msk.f32.mxu0 %vm2251_vm0, %v2250_v0 }
 0x3dd   : > { %v2176_v26 = vpop.eup %2175 }
 0x3de   : > { %1838 = vmatmul.mubr.f32.gmra.mrb[72].mxu0 %v2176_v26 }
 0x3df   : > { %1840 = vmatprep.mubr.msk.f32.mxu0 %vm2251_vm0, %v2250_v0 }
 0x3e1   : > { %v2178_v27 = vpop.eup %2177 }
 0x3e2   : > { %1841 = vmatmul.mubr.f32.gmra.mrb[74].mxu0 %v2178_v27 }
 0x3e3   : > { %1843 = vmatprep.mubr.msk.f32.mxu0 %vm2251_vm0, %v2250_v0 }
 0x3e5   : > { %v2180_v28 = vpop.eup %2179 }
 0x3e6   : > { %1844 = vmatmul.mubr.f32.gmra.mrb[76].mxu0 %v2180_v28  ;;  %v1359_v28 = vld [vmem:[%s2691_s3 + $0x5] ss:$0 sm:$0xff] }
 0x3e7   : > { %1878 = vmatprep.mubr.msk.f32.mxu0 %vm2251_vm0, %v2250_v0 }
 0x489   : > { %v1014_v39 = vpop.f32.mrb[52].mxu0 }
 0x48a   : > { %v1015_v40 = vadd.f32 %v2625_v38, %v1014_v39  ;;  %v1809_v41 = vpop.f32.mrb[53].mxu0 }
 0x48c   : > { %2181 = vtanh.f32 %v1015_v40 }
 0x48d   : > { %v1019_v42 = vpop.f32.mrb[54].mxu0 }
 0x48e   : > { %v1020_v43 = vadd.f32 %v2625_v38, %v1019_v42  ;;  %v1812_v44 = vpop.f32.mrb[55].mxu0 }
 0x490   : > { %2183 = vtanh.f32 %v1020_v43 }
 0x491   : > { %v1024_v45 = vpop.f32.mrb[56].mxu0 }
 0x492   : > { %v1025_v1 = vadd.f32 %v2625_v38, %v1024_v45  ;;  %v1815_v46 = vpop.f32.mrb[57].mxu0 }
 0x494   : > { %2185 = vtanh.f32 %v1025_v1 }
 0x495   : > { %v1029_v47 = vpop.f32.mrb[58].mxu0 }
 0x496   : > { %v2182_v48 = vpop.eup %2181  ;;  %v1030_v49 = vadd.f32 %v2625_v38, %v1029_v47  ;;  %v1818_v50 = vpop.f32.mrb[59].mxu0 }
 0x497   : > { %1879 = vmatmul.mubr.f32.vlgmr.msra.gmra.mrb[78].mxu0 %v2182_v48 }
 0x498   : > { %2187 = vtanh.f32 %v1030_v49  ;;  %1881 = vmatprep.mubr.msk.f32.mxu0 %vm2251_vm0, %v2250_v0 }
 0x499   : > { %v1034_v51 = vpop.f32.mrb[60].mxu0 }
 0x49a   : > { %v2184_v52 = vpop.eup %2183  ;;  %v1035_v53 = vadd.f32 %v2625_v38, %v1034_v51  ;;  %v1821_v54 = vpop.f32.mrb[61].mxu0 }
 0x49b   : > { %1882 = vmatmul.mubr.f32.gmra.mrb[80].mxu0 %v2184_v52 }
 0x49c   : > { %2189 = vtanh.f32 %v1035_v53  ;;  %1884 = vmatprep.mubr.msk.f32.mxu0 %vm2251_vm0, %v2250_v0 }
 0x49d   : > { %v1039_v55 = vpop.f32.mrb[62].mxu0 }
 0x49e   : > { %v2186_v56 = vpop.eup %2185  ;;  %v1040_v57 = vadd.f32 %v2625_v38, %v1039_v55  ;;  %v1824_v58 = vpop.f32.mrb[63].mxu0 }
 0x49f   : > { %1885 = vmatmul.mubr.f32.gmra.mrb[82].mxu0 %v2186_v56 }
 0x4a0   : > { %2191 = vtanh.f32 %v1040_v57 }
 0x4a1   : > { %v1044_v59 = vpop.f32.mrb[64].mxu0 }
 0x4a2   : > { %v2188_v60 = vpop.eup %2187  ;;  %v1045_v61 = vadd.f32 %v2625_v38, %v1044_v59  ;;  %v1827_v62 = vpop.f32.mrb[65].mxu0 }
 0x4a3   : > { %1888 = vmatmul.mubr.f32.vlgmr.msra.gmra.mrb[52].mxu1 %v2188_v60 }
 0x4a4   : > { %2193 = vtanh.f32 %v1045_v61  ;;  %1890 = vmatprep.mubr.msk.f32.mxu1 %vm2251_vm0, %v2250_v0 }
 0x4a5   : > { %v1049_v63 = vpop.f32.mrb[66].mxu0 }
 0x4a6   : > { %v2190_v2 = vpop.eup %2189  ;;  %v1050_v3 = vadd.f32 %v2625_v38, %v1049_v63  ;;  %v1830_v4 = vpop.f32.mrb[67].mxu0 }
 0x4a7   : > { %1891 = vmatmul.mubr.f32.gmra.mrb[54].mxu1 %v2190_v2 }
 0x4a8   : > { %2195 = vtanh.f32 %v1050_v3  ;;  %1893 = vmatprep.mubr.msk.f32.mxu1 %vm2251_vm0, %v2250_v0 }
 0x4a9   : > { %v1054_v5 = vpop.f32.mrb[68].mxu0 }
 0x4aa   : > { %v2192_v6 = vpop.eup %2191  ;;  %v1055_v7 = vadd.f32 %v2625_v38, %v1054_v5  ;;  %v1833_v8 = vpop.f32.mrb[69].mxu0 }
 0x4ab   : > { %1894 = vmatmul.mubr.f32.gmra.mrb[56].mxu1 %v2192_v6 }
 0x4ac   : > { %2197 = vtanh.f32 %v1055_v7  ;;  %1896 = vmatprep.mubr.msk.f32.mxu1 %vm2251_vm0, %v2250_v0 }
 0x4ad   : > { %v1059_v9 = vpop.f32.mrb[70].mxu0 }
 0x4ae   : > { %v2194_v10 = vpop.eup %2193  ;;  %v1060_v11 = vadd.f32 %v2625_v38, %v1059_v9  ;;  %v1836_v12 = vpop.f32.mrb[71].mxu0 }
 0x4af   : > { %1897 = vmatmul.mubr.f32.gmra.mrb[58].mxu1 %v2194_v10 }
 0x4b0   : > { %2199 = vtanh.f32 %v1060_v11  ;;  %1899 = vmatprep.mubr.msk.f32.mxu1 %vm2251_vm0, %v2250_v0 }
 0x4b1   : > { %v1064_v13 = vpop.f32.mrb[72].mxu0 }
 0x4b2   : > { %v2196_v14 = vpop.eup %2195  ;;  %v1065_v15 = vadd.f32 %v2625_v38, %v1064_v13  ;;  %v1839_v16 = vpop.f32.mrb[73].mxu0 }
 0x4b3   : > { %1900 = vmatmul.mubr.f32.gmra.mrb[60].mxu1 %v2196_v14 }
 0x4b4   : > { %2201 = vtanh.f32 %v1065_v15  ;;  %1902 = vmatprep.mubr.msk.f32.mxu1 %vm2251_vm0, %v2250_v0 }
 0x4b5   : > { %v1069_v17 = vpop.f32.mrb[74].mxu0 }
 0x4b6   : > { %v2198_v18 = vpop.eup %2197  ;;  %v1070_v19 = vadd.f32 %v2625_v38, %v1069_v17  ;;  %v1842_v20 = vpop.f32.mrb[75].mxu0 }
 0x4b7   : > { %1903 = vmatmul.mubr.f32.gmra.mrb[62].mxu1 %v2198_v18 }
 0x4b8   : > { %2203 = vtanh.f32 %v1070_v19  ;;  %1905 = vmatprep.mubr.msk.f32.mxu1 %vm2251_vm0, %v2250_v0 }
 0x4b9   : > { %v1074_v21 = vpop.f32.mrb[76].mxu0 }
 0x4ba   : > { %v2200_v22 = vpop.eup %2199  ;;  %v1075_v23 = vadd.f32 %v2625_v38, %v1074_v21  ;;  %v1845_v24 = vpop.f32.mrb[77].mxu0 }
 0x4bb   : > { %1906 = vmatmul.mubr.f32.gmra.mrb[64].mxu1 %v2200_v22 }
 0x4bc   : > { %2205 = vtanh.f32 %v1075_v23  ;;  %1908 = vmatprep.mubr.msk.f32.mxu1 %vm2251_vm0, %v2250_v0 }
 0x4be   : > { %v2202_v25 = vpop.eup %2201 }
 0x4bf   : > { %1909 = vmatmul.mubr.f32.gmra.mrb[66].mxu1 %v2202_v25 }
 0x4c0   : > { %1911 = vmatprep.mubr.msk.f32.mxu1 %vm2251_vm0, %v2250_v0 }
 0x4c2   : > { %v2204_v26 = vpop.eup %2203 }
 0x4c3   : > { %1912 = vmatmul.mubr.f32.gmra.mrb[68].mxu1 %v2204_v26 }
 0x4c4   : > { %1914 = vmatprep.mubr.msk.f32.mxu1 %vm2251_vm0, %v2250_v0 }
 0x4c6   : > { %v2206_v27 = vpop.eup %2205 }
 0x4c7   : > { %1915 = vmatmul.mubr.f32.gmra.mrb[70].mxu1 %v2206_v27 }
 0x56a   : > { %v1182_v29 = vpop.f32.mrb[78].mxu0 }
 0x56b   : > { %v1183_v30 = vadd.f32 %v1359_v28, %v1182_v29  ;;  %v1880_v31 = vpop.f32.mrb[79].mxu0 }
 0x56d   : > { %1246 = vst [vmem:[%s2670_s30] sm:$0xff] %v1183_v30 }
 0x56e   : > { %v1187_v0 = vpop.f32.mrb[80].mxu0 }
 0x56f   : > { %v1188_v32 = vadd.f32 %v1359_v28, %v1187_v0  ;;  %v1883_v33 = vpop.f32.mrb[81].mxu0 }
 0x571   : > { %1247 = vst [vmem:[%s2670_s30 + $0x8] sm:$0xff] %v1188_v32 }
 0x572   : > { %v1192_v34 = vpop.f32.mrb[82].mxu0 }
 0x573   : > { %v1193_v35 = vadd.f32 %v1359_v28, %v1192_v34  ;;  %v1886_v36 = vpop.f32.mrb[83].mxu0 }
 0x575   : > { %1248 = vst [vmem:[%s2670_s30 + $0x10] sm:$0xff] %v1193_v35 }
 0x576   : > { %v1197_v37 = vpop.f32.mrb[52].mxu1 }
 0x577   : > { %v1198_v38 = vadd.f32 %v1359_v28, %v1197_v37  ;;  %v1889_v39 = vpop.f32.mrb[53].mxu1 }
 0x579   : > { %1249 = vst [vmem:[%s2670_s30 + $0x18] sm:$0xff] %v1198_v38 }
 0x57a   : > { %v1202_v40 = vpop.f32.mrb[54].mxu1 }
 0x57b   : > { %v1203_v41 = vadd.f32 %v1359_v28, %v1202_v40  ;;  %v1892_v42 = vpop.f32.mrb[55].mxu1 }
 0x57d   : > { %1250 = vst [vmem:[%s2670_s30 + $0x20] sm:$0xff] %v1203_v41 }
 0x57e   : > { %v1207_v43 = vpop.f32.mrb[56].mxu1 }
 0x57f   : > { %v1208_v44 = vadd.f32 %v1359_v28, %v1207_v43  ;;  %v1895_v45 = vpop.f32.mrb[57].mxu1 }
 0x581   : > { %1251 = vst [vmem:[%s2670_s30 + $0x28] sm:$0xff] %v1208_v44 }
 0x582   : > { %v1212_v1 = vpop.f32.mrb[58].mxu1 }
 0x583   : > { %v1213_v46 = vadd.f32 %v1359_v28, %v1212_v1  ;;  %v1898_v47 = vpop.f32.mrb[59].mxu1 }
 0x585   : > { %1252 = vst [vmem:[%s2670_s30 + $0x30] sm:$0xff] %v1213_v46 }
 0x586   : > { %v1217_v48 = vpop.f32.mrb[60].mxu1 }
 0x587   : > { %v1218_v49 = vadd.f32 %v1359_v28, %v1217_v48  ;;  %v1901_v50 = vpop.f32.mrb[61].mxu1 }
 0x589   : > { %1253 = vst [vmem:[%s2670_s30 + $0x38] sm:$0xff] %v1218_v49 }
 0x58a   : > { %v1222_v51 = vpop.f32.mrb[62].mxu1 }
 0x58b   : > { %v1223_v52 = vadd.f32 %v1359_v28, %v1222_v51  ;;  %v1904_v53 = vpop.f32.mrb[63].mxu1 }
 0x58d   : > { %1254 = vst [vmem:[%s2670_s30 + $0x40] sm:$0xff] %v1223_v52 }
 0x58e   : > { %v1227_v54 = vpop.f32.mrb[64].mxu1 }
 0x58f   : > { %v1228_v55 = vadd.f32 %v1359_v28, %v1227_v54  ;;  %v1907_v56 = vpop.f32.mrb[65].mxu1 }
 0x591   : > { %1255 = vst [vmem:[%s2670_s30 + $0x48] sm:$0xff] %v1228_v55 }
 0x592   : > { %v1232_v57 = vpop.f32.mrb[66].mxu1 }
 0x593   : > { %v1233_v58 = vadd.f32 %v1359_v28, %v1232_v57  ;;  %v1910_v59 = vpop.f32.mrb[67].mxu1 }
 0x595   : > { %1256 = vst [vmem:[%s2670_s30 + $0x50] sm:$0xff] %v1233_v58 }
 0x596   : > { %v1237_v60 = vpop.f32.mrb[68].mxu1 }
 0x597   : > { %v1238_v61 = vadd.f32 %v1359_v28, %v1237_v60  ;;  %v1913_v62 = vpop.f32.mrb[69].mxu1 }
 0x599   : > { %1257 = vst [vmem:[%s2670_s30 + $0x58] sm:$0xff] %v1238_v61 }
 0x59a   : > { %v1242_v63 = vpop.f32.mrb[70].mxu1 }
 0x59b   : > { %v1243_v2 = vadd.f32 %v1359_v28, %v1242_v63  ;;  %v1916_v3 = vpop.f32.mrb[71].mxu1 }
 0x59d   : > { %1258 = vst [vmem:[%s2670_s30 + $0x60] sm:$0xff] %v1243_v2 }
 0x59e PF: > { %s15_s15 = sadd.s32 1, %s2245_s15  }
 0x59f   : > { %p12_p3 = scmp.ge.s32.totalorder %s15_s15, 4  }
 0x5a1   :  { %14 = sbr.rel (!%p12_p3) target bundleno = 1 (0x1), region = 80 }
 0x5a8   :  { %1281 = vsyncpa [#allocation3], 1 }
 0x5a9   :  { %1283 = vsyncpa [#allocation3 + $0x1], 1 }

</bundles_post_ra>
